<compile_context>
chip_gen: v7x
topology: tpu7x:2x2x1
jax: 0.10.0
libtpu: 0.0.40
codegen_flags: <defaults>
</compile_context>

<pallas_src>
import jax
import jax.numpy as jnp
from jax.experimental import pallas as pl
from jax.experimental.pallas import tpu as pltpu


def custom_nll_loss_pallas(x, targets, *, tm=None):
    """x: [N, C] logits, targets: [N] int class ids. Returns scalar loss p + r."""
    N, C = x.shape
    assert C >= 2, "loss reads log-softmax columns 0 and 1"
    itemsize = jnp.dtype(x.dtype).itemsize

    # ---- Row-tile sizing: ~2 MiB of logical logits per tile, sublane aligned. ----
    n_rup8 = max(8, ((N + 7) // 8) * 8)
    if tm is None:
        target_tile_bytes = 2 * 1024 * 1024
        tm = target_tile_bytes // max(1, C * itemsize)
    tm = max(8, min(4096, (int(tm) // 8) * 8))
    tm = min(tm, n_rup8)

    # Lane-padded per-row VMEM footprint (C pads to a multiple of 128 lanes):
    #   x tile (double-buffered) + targets tile (double-buffered)
    #   + (tm, 4) accumulator + ~3 f32 temporaries for the log-softmax.
    c_pad = ((C + 127) // 128) * 128
    lane_row = 128 * 4
    per_row_vmem = 2 * c_pad * itemsize + 2 * lane_row + lane_row + 3 * c_pad * 4
    vmem_budget = 24 * 1024 * 1024                       # conservative for v7x (64 MiB phys)
    tm = min(tm, max(8, (vmem_budget // per_row_vmem) // 8 * 8))
    vmem_limit = int(min(48 * 1024 * 1024,
                         max(16 * 1024 * 1024, per_row_vmem * tm + 4 * 1024 * 1024)))

    n_blocks = pl.cdiv(N, tm)
    num_parts = 2 if n_blocks >= 2 else 1                # v7x: 2 TCs; harmless on v5e/v6e
    tiles_per_part = pl.cdiv(n_blocks, num_parts)

    t2d = targets.reshape(N, 1).astype(jnp.int32)

    def row_block(pid, tid):
        b = pid * tiles_per_part + tid
        return (jnp.minimum(b, n_blocks - 1), 0)         # clamp redundant trailing blocks

    def kernel(x_ref, t_ref, o_ref, acc_ref):
        pid = pl.program_id(0)                           # partition (core) axis: parallel
        tid = pl.program_id(1)                           # row-tile axis: reduction

        @pl.when(tid == 0)
        def _init():
            acc_ref[...] = jnp.zeros_like(acc_ref)

        # Row-validity mask: last tile may overhang N (no wrapper pad), and any
        # clamped redundant tile of the second partition must contribute zero.
        row = jax.lax.broadcasted_iota(jnp.int32, (tm, 1), 0)
        g_row = (pid * tiles_per_part + tid) * tm + row
        valid = g_row < N

        # f32 log-softmax (columns 0/1 only are ever read by the loss).
        # TODO(synk): on v7x with bf16 inputs keep exp in bf16 (f32 sum) so the
        # single EUP does not co-limit the kernel; unsafe on v5e (no bf16 EUP).
        xv = x_ref[...].astype(jnp.float32)                          # (tm, C)
        m = jnp.max(xv, axis=-1, keepdims=True)                      # (tm, 1)
        lse = jnp.log(jnp.sum(jnp.exp(xv - m), axis=-1, keepdims=True)) + m
        log0 = xv[:, 0:1] - lse
        log1 = xv[:, 1:2] - lse

        t = t_ref[...]                                               # (tm, 1) int32
        is0 = valid & (t == 0)
        is1 = valid & (t == 1)

        # Per-row VMEM accumulator, plain VPU adds; jnp.where selects (never a
        # multiply) so garbage/NaN in masked rows cannot reach the sums.
        acc_ref[:, 0:1] += jnp.where(is0, log0, 0.0)
        acc_ref[:, 1:2] += is0.astype(jnp.float32)
        acc_ref[:, 2:3] += jnp.where(is1, log1, 0.0)
        acc_ref[:, 3:4] += is1.astype(jnp.float32)

        @pl.when(tid == pl.num_programs(1) - 1)
        def _finalize():
            # One cross-sublane reduction per partition; combined in the wrapper.
            part = jnp.sum(acc_ref[...], axis=0, keepdims=True)      # (1, 4)
            o_ref[...] = part[None, :, :]                            # (1, 1, 4)

    partials = pl.pallas_call(
        kernel,
        out_shape=jax.ShapeDtypeStruct((num_parts, 1, 4), jnp.float32),
        grid_spec=pltpu.PrefetchScalarGridSpec(
            num_scalar_prefetch=0,
            grid=(num_parts, tiles_per_part),
            in_specs=[
                pl.BlockSpec((tm, C), row_block),        # logits tile (no wrapper pad)
                pl.BlockSpec((tm, 1), row_block),        # targets tile
            ],
            out_specs=pl.BlockSpec((1, 1, 4), lambda pid, tid: (pid, 0, 0)),
            scratch_shapes=[pltpu.VMEM((tm, 4), jnp.float32)],
        ),
        compiler_params=pltpu.CompilerParams(
            dimension_semantics=("parallel", "arbitrary"),
            vmem_limit_bytes=vmem_limit,
        ),
        cost_estimate=pl.CostEstimate(
            flops=6 * N * C,
            transcendentals=N * C,
            bytes_accessed=N * C * itemsize + N * 4 + num_parts * 4 * 4,
        ),
    )(x, t2d)

    totals = jnp.sum(partials, axis=(0, 1))              # [sum0, cnt0, sum1, cnt1]
    # sum == 0 whenever count == 0, so max(count, 1) reproduces "empty list -> 0".
    p_loss = -totals[0] / jnp.maximum(totals[1], 1.0)
    r_loss = -totals[2] / jnp.maximum(totals[3], 1.0)
    return p_loss + r_loss


if __name__ == "__main__":
    # Small shapes consistent with the module: N samples, C classes, targets
    # mostly in {0, 1} plus another class id the loss must ignore. N is NOT a
    # multiple of the tile so the in-kernel ragged-row masking is exercised.
    N, C = 100, 8
    key = jax.random.PRNGKey(0)
    kx, kt = jax.random.split(key)

    x = jax.random.normal(kx, (N, C), dtype=jnp.float32)
    targets = jax.random.randint(kt, (N,), 0, 3, dtype=jnp.int32)   # 0, 1 or 2

    # Reference: mirror the torch forward loop exactly.
    logs = jax.nn.log_softmax(x, axis=1).tolist()
    t_list = targets.tolist()
    ones, zeros = [], []
    for i in range(N):
        cur = t_list[i]
        if cur == 1:
            ones.append(logs[i][cur])
        elif cur == 0:
            zeros.append(logs[i][cur])
    r_ref = (-sum(ones) / len(ones)) if ones else 0.0
    p_ref = (-sum(zeros) / len(zeros)) if zeros else 0.0
    ref = p_ref + r_ref

    # Auto-sized single-tile path, then a forced small tile that exercises the
    # multi-tile accumulation, block clamping and the 2-partition partial sum.
    for tm_arg in (None, 16):
        out = custom_nll_loss_pallas(x, targets, tm=tm_arg)
        jax.block_until_ready(out)
        assert abs(float(out) - ref) < 1e-4, (tm_arg, float(out), ref)

    print("KERNEL_OK")
</pallas_src>

<mosaic_0001>
module attributes {stable_mosaic.version = 11 : i64} {
  func.func @kernel(%arg0: i32, %arg1: i32, %arg2: memref<104x8xf32, #tpu.memory_space<vmem>>, %arg3: memref<104x1xi32, #tpu.memory_space<vmem>>, %arg4: memref<1x1x4xf32, #tpu.memory_space<vmem>>, %arg5: memref<104x4xf32, #tpu.memory_space<vmem>>) attributes {dimension_semantics = [#tpu.dimension_semantics<parallel>, #tpu.dimension_semantics<arbitrary>], iteration_bounds = array<i64: 1, 1>, scalar_prefetch = 0 : i64, scratch_operands = 1 : i64, tpu.core_type = #tpu.core_type<tc>, window_params = [{transform_indices = @transform_0, window_bounds = array<i64: 104, 8>}, {transform_indices = @transform_1, window_bounds = array<i64: 104, 1>}, {transform_indices = @transform_2, window_bounds = array<i64: 1, 1, 4>}]} {
    %c0_i32 = arith.constant 0 : i32
    %0 = arith.cmpi eq, %arg1, %c0_i32 : i32
    %1 = arith.extui %0 : i1 to i32
    %c0_i32_0 = arith.constant 0 : i32
    %2 = arith.cmpi ne, %1, %c0_i32_0 : i32
    scf.if %2 {
      %cst_24 = arith.constant 0.000000e+00 : f32
      %55 = vector.broadcast %cst_24 : f32 to vector<104x4xf32>
      %c0_25 = arith.constant 0 : index
      %c0_26 = arith.constant 0 : index
      %56 = vector.load %arg5[%c0_25, %c0_26] : memref<104x4xf32, #tpu.memory_space<vmem>>, vector<104x4xf32>
      tpu.vector_store %arg5[%c0_25, %c0_26], %55 {strides = array<i32>} : memref<104x4xf32, #tpu.memory_space<vmem>>, vector<104x4xf32>,
    } else {
    }
    %3 = tpu.iota {dimensions = array<i32: 0>} : vector<104x1xi32>
    %c1_i32 = arith.constant 1 : i32
    %4 = arith.muli %arg0, %c1_i32 : i32
    %5 = arith.addi %4, %arg1 : i32
    %c104_i32 = arith.constant 104 : i32
    %6 = arith.muli %5, %c104_i32 : i32
    %7 = vector.broadcast %6 : i32 to vector<104x1xi32>
    %8 = arith.addi %7, %3 : vector<104x1xi32>
    %c100_i32 = arith.constant 100 : i32
    %9 = vector.broadcast %c100_i32 : i32 to vector<104x1xi32>
    %10 = arith.cmpi slt, %8, %9 : vector<104x1xi32>
    %c0 = arith.constant 0 : index
    %c0_1 = arith.constant 0 : index
    %11 = vector.load %arg2[%c0, %c0_1] : memref<104x8xf32, #tpu.memory_space<vmem>>, vector<104x8xf32>
    %cst = arith.constant dense<0xFF800000> : vector<104xf32>
    %12 = vector.multi_reduction <maximumf>, %11, %cst [1] : vector<104x8xf32> to vector<104xf32>
    %13 = vector.shape_cast %12 : vector<104xf32> to vector<104x1xf32>
    %14 = vector.broadcast %13 : vector<104x1xf32> to vector<104x8xf32>
    %15 = arith.subf %11, %14 : vector<104x8xf32>
    %16 = math.exp %15 : vector<104x8xf32>
    %cst_2 = arith.constant dense<0.000000e+00> : vector<104xf32>
    %17 = vector.multi_reduction <add>, %16, %cst_2 [1] : vector<104x8xf32> to vector<104xf32>
    %18 = vector.shape_cast %17 : vector<104xf32> to vector<104x1xf32>
    %19 = math.log %18 : vector<104x1xf32>
    %20 = arith.addf %19, %13 : vector<104x1xf32>
    %21 = vector.extract_strided_slice %11 {offsets = [0, 0], sizes = [104, 1], strides = [1, 1]} : vector<104x8xf32> to vector<104x1xf32>
    %22 = arith.subf %21, %20 : vector<104x1xf32>
    %23 = vector.extract_strided_slice %11 {offsets = [0, 1], sizes = [104, 1], strides = [1, 1]} : vector<104x8xf32> to vector<104x1xf32>
    %24 = arith.subf %23, %20 : vector<104x1xf32>
    %c0_3 = arith.constant 0 : index
    %c0_4 = arith.constant 0 : index
    %25 = vector.load %arg3[%c0_3, %c0_4] : memref<104x1xi32, #tpu.memory_space<vmem>>, vector<104x1xi32>
    %c0_i32_5 = arith.constant 0 : i32
    %26 = vector.broadcast %c0_i32_5 : i32 to vector<104x1xi32>
    %27 = arith.cmpi eq, %25, %26 : vector<104x1xi32>
    %28 = arith.andi %10, %27 : vector<104x1xi1>
    %c1_i32_6 = arith.constant 1 : i32
    %29 = vector.broadcast %c1_i32_6 : i32 to vector<104x1xi32>
    %30 = arith.cmpi eq, %25, %29 : vector<104x1xi32>
    %31 = arith.andi %10, %30 : vector<104x1xi1>
    %c0_7 = arith.constant 0 : index
    %c0_8 = arith.constant 0 : index
    %32 = vector.load %arg5[%c0_7, %c0_8] : memref<104x4xf32, #tpu.memory_space<vmem>>, vector<104x1xf32>
    %cst_9 = arith.constant 0.000000e+00 : f32
    %33 = vector.broadcast %cst_9 : f32 to vector<104x1xf32>
    %34 = arith.select %28, %22, %33 : vector<104x1xi1>, vector<104x1xf32>
    %35 = arith.addf %32, %34 : vector<104x1xf32>
    %c0_10 = arith.constant 0 : index
    %c0_11 = arith.constant 0 : index
    %36 = vector.load %arg5[%c0_10, %c0_11] : memref<104x4xf32, #tpu.memory_space<vmem>>, vector<104x1xf32>
    tpu.vector_store %arg5[%c0_10, %c0_11], %35 {strides = array<i32>} : memref<104x4xf32, #tpu.memory_space<vmem>>, vector<104x1xf32>,
    %c0_12 = arith.constant 0 : index
    %c1 = arith.constant 1 : index
    %37 = vector.load %arg5[%c0_12, %c1] : memref<104x4xf32, #tpu.memory_space<vmem>>, vector<104x1xf32>
    %38 = arith.extui %28 : vector<104x1xi1> to vector<104x1xi32>
    %39 = arith.sitofp %38 : vector<104x1xi32> to vector<104x1xf32>
    %40 = arith.addf %37, %39 : vector<104x1xf32>
    %c0_13 = arith.constant 0 : index
    %c1_14 = arith.constant 1 : index
    %41 = vector.load %arg5[%c0_13, %c1_14] : memref<104x4xf32, #tpu.memory_space<vmem>>, vector<104x1xf32>
    tpu.vector_store %arg5[%c0_13, %c1_14], %40 {strides = array<i32>} : memref<104x4xf32, #tpu.memory_space<vmem>>, vector<104x1xf32>,
    %c0_15 = arith.constant 0 : index
    %c2 = arith.constant 2 : index
    %42 = vector.load %arg5[%c0_15, %c2] : memref<104x4xf32, #tpu.memory_space<vmem>>, vector<104x1xf32>
    %cst_16 = arith.constant 0.000000e+00 : f32
    %43 = vector.broadcast %cst_16 : f32 to vector<104x1xf32>
    %44 = arith.select %31, %24, %43 : vector<104x1xi1>, vector<104x1xf32>
    %45 = arith.addf %42, %44 : vector<104x1xf32>
    %c0_17 = arith.constant 0 : index
    %c2_18 = arith.constant 2 : index
    %46 = vector.load %arg5[%c0_17, %c2_18] : memref<104x4xf32, #tpu.memory_space<vmem>>, vector<104x1xf32>
    tpu.vector_store %arg5[%c0_17, %c2_18], %45 {strides = array<i32>} : memref<104x4xf32, #tpu.memory_space<vmem>>, vector<104x1xf32>,
    %c0_19 = arith.constant 0 : index
    %c3 = arith.constant 3 : index
    %47 = vector.load %arg5[%c0_19, %c3] : memref<104x4xf32, #tpu.memory_space<vmem>>, vector<104x1xf32>
    %48 = arith.extui %31 : vector<104x1xi1> to vector<104x1xi32>
    %49 = arith.sitofp %48 : vector<104x1xi32> to vector<104x1xf32>
    %50 = arith.addf %47, %49 : vector<104x1xf32>
    %c0_20 = arith.constant 0 : index
    %c3_21 = arith.constant 3 : index
    %51 = vector.load %arg5[%c0_20, %c3_21] : memref<104x4xf32, #tpu.memory_space<vmem>>, vector<104x1xf32>
    tpu.vector_store %arg5[%c0_20, %c3_21], %50 {strides = array<i32>} : memref<104x4xf32, #tpu.memory_space<vmem>>, vector<104x1xf32>,
    %c0_i32_22 = arith.constant 0 : i32
    %52 = arith.cmpi eq, %arg1, %c0_i32_22 : i32
    %53 = arith.extui %52 : i1 to i32
    %c0_i32_23 = arith.constant 0 : i32
    %54 = arith.cmpi ne, %53, %c0_i32_23 : i32
    scf.if %54 {
      %c0_24 = arith.constant 0 : index
      %c0_25 = arith.constant 0 : index
      %55 = vector.load %arg5[%c0_24, %c0_25] : memref<104x4xf32, #tpu.memory_space<vmem>>, vector<104x4xf32>
      %cst_26 = arith.constant dense<0.000000e+00> : vector<4xf32>
      %56 = vector.multi_reduction <add>, %55, %cst_26 [0] : vector<104x4xf32> to vector<4xf32>
      %57 = vector.shape_cast %56 : vector<4xf32> to vector<1x4xf32>
      %58 = vector.shape_cast %57 : vector<1x4xf32> to vector<1x1x4xf32>
      %c0_27 = arith.constant 0 : index
      %c0_28 = arith.constant 0 : index
      %c0_29 = arith.constant 0 : index
      %59 = vector.load %arg4[%c0_27, %c0_28, %c0_29] : memref<1x1x4xf32, #tpu.memory_space<vmem>>, vector<1x1x4xf32>
      tpu.vector_store %arg4[%c0_27, %c0_28, %c0_29], %58 {strides = array<i32>} : memref<1x1x4xf32, #tpu.memory_space<vmem>>, vector<1x1x4xf32>,
    } else {
    }
    return
  }
  func.func @transform_0(%arg0: i32, %arg1: i32) -> (i32, i32) {
    %c1_i32 = arith.constant 1 : i32
    %0 = arith.muli %arg0, %c1_i32 : i32
    %1 = arith.addi %0, %arg1 : i32
    %c0_i32 = arith.constant 0 : i32
    %2 = arith.minsi %1, %c0_i32 : i32
    %c0_i32_0 = arith.constant 0 : i32
    %c0_i32_1 = arith.constant 0 : i32
    return %2, %c0_i32_0 : i32, i32
  }
  func.func @transform_1(%arg0: i32, %arg1: i32) -> (i32, i32) {
    %c1_i32 = arith.constant 1 : i32
    %0 = arith.muli %arg0, %c1_i32 : i32
    %1 = arith.addi %0, %arg1 : i32
    %c0_i32 = arith.constant 0 : i32
    %2 = arith.minsi %1, %c0_i32 : i32
    %c0_i32_0 = arith.constant 0 : i32
    %c0_i32_1 = arith.constant 0 : i32
    return %2, %c0_i32_0 : i32, i32
  }
  func.func @transform_2(%arg0: i32, %arg1: i32) -> (i32, i32, i32) {
    %c0_i32 = arith.constant 0 : i32
    %c0_i32_0 = arith.constant 0 : i32
    %c0_i32_1 = arith.constant 0 : i32
    return %arg0, %c0_i32, %c0_i32_0 : i32, i32, i32
  }
}

</mosaic_0001>

<bundles_post_ra>
// kernel: tpu_custom_call.1
= control target key start
LH: loop header
LB: loop body
LE: loop exit
PB: predicated region body
PF: predicated region fallthrough
CT: control target
= control target key end

     0   :  { %vm150_vm0 = vcmask 64512   ;;  %s1665_s0 = inlined_call_operand.vmem [shape: f32[100,8], index: 0, kind: input, shape index: {}]   ;;  %s1666_s1 = inlined_call_operand.vmem [shape: s32[100,1], index: 1, kind: input, shape index: {}]   ;;  %s1667_s2 = inlined_call_operand.hbm [shape: f32[1,1,4], index: 2, kind: output, shape index: {}]  }
   0x1   :  { %v1102_v0 = vld [vmem:[%s1665_s0] sm:$0xff]  ;;  %v1107_v1 = vld [vmem:[%s1665_s0 + $0x10] sm:$0xff]  ;;  %v1112_v2 = vld [vmem:[%s1665_s0 + $0x8] sm:$0xff] }
   0x2   :  { %v151_v3 = vsel %vm150_vm0, %v1102_v0, -inf  ;;  %v157_v4 = vsel %vm150_vm0, %v1107_v1, -inf  ;;  %v1121_v5 = vld [vmem:[%s1665_s0 + $0x18] sm:$0xff]  ;;  %v154_v6 = vsel %vm150_vm0, %v1112_v2, -inf  ;;  %v1130_v8 = vld [vmem:[%s1665_s0 + $0x20] sm:$0xff]  ;;  %v1135_v9 = vld [vmem:[%s1665_s0 + $0x28] sm:$0xff] }
   0x3   :  { %152 = vmax.xlane.f32.xlu0 %v151_v3  ;;  %158 = vmax.xlane.f32.xlu1 %v157_v4  ;;  %v160_v7 = vsel %vm150_vm0, %v1121_v5, -inf }
   0x4   :  { %7 = vsyncpa [#allocation4], 0  ;;  %v163_v10 = vsel %vm150_vm0, %v1130_v8, -inf  ;;  %v166_v11 = vsel %vm150_vm0, %v1135_v9, -inf  ;;  %v1144_v12 = vld [vmem:[%s1665_s0 + $0x30] sm:$0xff]  ;;  %v1149_v13 = vld [vmem:[%s1665_s0 + $0x38] sm:$0xff] }
   0x5   :  { %v169_v14 = vsel %vm150_vm0, %v1144_v12, -inf  ;;  %v172_v15 = vsel %vm150_vm0, %v1149_v13, -inf  ;;  %v1158_v16 = vld [vmem:[%s1665_s0 + $0x40] sm:$0xff]  ;;  %v1163_v17 = vld [vmem:[%s1665_s0 + $0x48] sm:$0xff]  ;;  %v1172_v20 = vld [vmem:[%s1665_s0 + $0x50] sm:$0xff]  ;;  %vm80_vm1 = vcmask 31744  }
   0x6   :  { %v175_v18 = vsel %vm150_vm0, %v1158_v16, -inf  ;;  %v178_v19 = vsel %vm150_vm0, %v1163_v17, -inf  ;;  %v1177_v21 = vld [vmem:[%s1665_s0 + $0x58] sm:$0xff]  ;;  %v181_v22 = vsel %vm150_vm0, %v1172_v20, -inf  ;;  %v1186_v24 = vld [vmem:[%s1665_s0 + $0x60] sm:$0xff]  ;;  %vm424_vm3 = vcmask 7168  }
   0x7   :  { %155 = vmax.xlane.f32.xlu0 %v154_v6  ;;  %161 = vmax.xlane.f32.xlu1 %v160_v7  ;;  %v184_v23 = vsel %vm150_vm0, %v1177_v21, -inf  ;;  %v187_v25 = vsel %vm150_vm0, %v1186_v24, -inf  ;;  %s1079_s12 = smov 127   ;;  %s1081_s5 = smov 3  }
   0x8   :  { %s1082_s6 = smov 2   ;;  %s1083_s0 = smov [#allocation3]  }
   0x9   :  { %s887_s7 = sshll.u32 %s1083_s0, 4  ;;  %s888_s7 = int_to_ptr.vmem [resolvable:$true] %s887_s7 }
   0xa   :  { %s1054_s8 = scalar_lea.vmem %s888_s7, 16  ;;  %s1058_s9 = scalar_lea.vmem %s888_s7, 32 }
   0xb   :  { %164 = vmax.xlane.f32.xlu0 %v163_v10  ;;  %167 = vmax.xlane.f32.xlu1 %v166_v11  ;;  %p1055_p0 = scmp.ne.s32.totalorder %s888_s7, %s1054_s8  ;;  %p1059_p1 = scmp.lt.s32.totalorder %s888_s7, %s888_s7 }
   0xc   :  { %p1060_p2 = scmp.lt.s32.totalorder %s1058_s9, %s1054_s8 }
   0xe   :  { %p1061_p3 = por %p1060_p2, %p1059_p1 }
   0xf   :  { %170 = vmax.xlane.f32.xlu0 %v169_v14  ;;  %173 = vmax.xlane.f32.xlu1 %v172_v15 }
  0x10   :  { %p1062_p4 = pnand %p1061_p3, %p1055_p0 }
  0x13   :  { %176 = vmax.xlane.f32.xlu0 %v175_v18  ;;  %179 = vmax.xlane.f32.xlu1 %v178_v19 }
  0x17   :  { %182 = vmax.xlane.f32.xlu0 %v181_v22  ;;  %185 = vmax.xlane.f32.xlu1 %v184_v23 }
  0x1b   :  { %188 = vmax.xlane.f32.xlu0 %v187_v25 }
  0x90   :  { %v1190_v26 = vpop.xlane.xlu0 %152  ;;  %v1192_v27 = vpop.xlane.xlu1 %158 }
  0x91   :  { %v190_v28 = vsub.f32 %v1102_v0, %v1190_v26  ;;  %v192_v29 = vsub.f32 %v1107_v1, %v1192_v27 }
  0x93   :  { %v203_v30 = vmul.f32 1.442695, %v190_v28  ;;  %v207_v31 = vmul.f32 1.442695, %v192_v29 }
  0x94   :  { %v1198_v32 = vpop.xlane.xlu0 %155  ;;  %v1200_v33 = vpop.xlane.xlu1 %161 }
  0x95   :  { %984 = vpow2.f32 %v203_v30  ;;  %v191_v34 = vsub.f32 %v1112_v2, %v1198_v32  ;;  %v193_v35 = vsub.f32 %v1121_v5, %v1200_v33 }
  0x96   :  { %986 = vpow2.f32 %v207_v31 }
  0x97   :  { %v205_v36 = vmul.f32 1.442695, %v191_v34  ;;  %v209_v37 = vmul.f32 1.442695, %v193_v35 }
  0x98   :  { %v1206_v38 = vpop.xlane.xlu0 %164  ;;  %v1208_v39 = vpop.xlane.xlu1 %167 }
  0x99   :  { %988 = vpow2.f32 %v205_v36  ;;  %v194_v40 = vsub.f32 %v1130_v8, %v1206_v38  ;;  %v195_v41 = vsub.f32 %v1135_v9, %v1208_v39 }
  0x9a   :  { %990 = vpow2.f32 %v209_v37 }
  0x9b   :  { %v211_v42 = vmul.f32 1.442695, %v194_v40  ;;  %v213_v43 = vmul.f32 1.442695, %v195_v41 }
  0x9c   :  { %v1214_v44 = vpop.xlane.xlu0 %170  ;;  %v1216_v45 = vpop.xlane.xlu1 %173 }
  0x9d   :  { %992 = vpow2.f32 %v211_v42  ;;  %v196_v46 = vsub.f32 %v1144_v12, %v1214_v44  ;;  %v197_v47 = vsub.f32 %v1149_v13, %v1216_v45 }
  0x9e   :  { %994 = vpow2.f32 %v213_v43 }
  0x9f   :  { %v985_v48 = vpop.eup %984  ;;  %v215_v49 = vmul.f32 1.442695, %v196_v46  ;;  %v217_v50 = vmul.f32 1.442695, %v197_v47 }
  0xa0   :  { %v987_v51 = vpop.eup %986  ;;  %v1222_v52 = vpop.xlane.xlu0 %176  ;;  %v229_v53 = vsel %vm150_vm0, %v985_v48, 0.0  ;;  %v1078_v48 = vmov 0.0  }
  0xa1   :  { %v1225_v54 = vpop.xlane.xlu1 %179  ;;  %996 = vpow2.f32 %v215_v49  ;;  %v198_v55 = vsub.f32 %v1158_v16, %v1222_v52  ;;  %230 = vadd.xlane.f32.xlu1 %v229_v53  ;;  %v235_v57 = vsel %vm150_vm0, %v987_v51, 0.0  ;;  %81 = vst.msk [vmem:[#allocation2] sm:$0xff] %vm80_vm1, %v1078_v48  ;;  %82 = vst.msk [vmem:[#allocation2 + $0x8] sm:$0xff] %vm80_vm1, %v1078_v48 }
  0xa2   :  { %v199_v56 = vsub.f32 %v1163_v17, %v1225_v54  ;;  %998 = vpow2.f32 %v217_v50  ;;  %83 = vst.msk [vmem:[#allocation2 + $0x10] sm:$0xff] %vm80_vm1, %v1078_v48  ;;  %84 = vst.msk [vmem:[#allocation2 + $0x18] sm:$0xff] %vm80_vm1, %v1078_v48 }
  0xa3   :  { %v989_v58 = vpop.eup %988  ;;  %v219_v59 = vmul.f32 1.442695, %v198_v55  ;;  %85 = vst.msk [vmem:[#allocation2 + $0x20] sm:$0xff] %vm80_vm1, %v1078_v48  ;;  %86 = vst.msk [vmem:[#allocation2 + $0x28] sm:$0xff] %vm80_vm1, %v1078_v48 }
  0xa4   :  { %v221_v60 = vmul.f32 1.442695, %v199_v56  ;;  %v991_v61 = vpop.eup %990  ;;  %v1232_v62 = vpop.xlane.xlu0 %182  ;;  %v232_v63 = vsel %vm150_vm0, %v989_v58, 0.0  ;;  %87 = vst.msk [vmem:[#allocation2 + $0x30] sm:$0xff] %vm80_vm1, %v1078_v48  ;;  %88 = vst.msk [vmem:[#allocation2 + $0x38] sm:$0xff] %vm80_vm1, %v1078_v48 }
  0xa5   :  { %v1235_v3 = vpop.xlane.xlu1 %185  ;;  %1000 = vpow2.f32 %v219_v59  ;;  %v200_v4 = vsub.f32 %v1172_v20, %v1232_v62  ;;  %236 = vadd.xlane.f32.xlu1 %v235_v57  ;;  %233 = vadd.xlane.f32.xlu0 %v232_v63  ;;  %v238_v7 = vsel %vm150_vm0, %v991_v61, 0.0  ;;  %89 = vst.msk [vmem:[#allocation2 + $0x40] sm:$0xff] %vm80_vm1, %v1078_v48  ;;  %90 = vst.msk [vmem:[#allocation2 + $0x48] sm:$0xff] %vm80_vm1, %v1078_v48 }
  0xa6   :  { %v201_v6 = vsub.f32 %v1177_v21, %v1235_v3  ;;  %1002 = vpow2.f32 %v221_v60  ;;  %91 = vst.msk [vmem:[#allocation2 + $0x50] sm:$0xff] %vm80_vm1, %v1078_v48  ;;  %92 = vst.msk [vmem:[#allocation2 + $0x58] sm:$0xff] %vm80_vm1, %v1078_v48  ;;  %v1284_v60 = vld [vmem:[%s1666_s1] sm:$0xff] }
  0xa7   :  { %v993_v10 = vpop.eup %992  ;;  %v223_v11 = vmul.f32 1.442695, %v200_v4  ;;  %93 = vst.msk [vmem:[#allocation2 + $0x60] sm:$0xff] %vm80_vm1, %v1078_v48  ;;  %vm333_vm2 = vcmp.eq.s32.totalorder %v1284_v60, 0 }
  0xa8   :  { %v225_v14 = vmul.f32 1.442695, %v201_v6  ;;  %v995_v15 = vpop.eup %994  ;;  %v1242_v18 = vpop.xlane.xlu0 %188  ;;  %v241_v19 = vsel %vm150_vm0, %v993_v10, 0.0 }
  0xa9   :  { %1004 = vpow2.f32 %v223_v11  ;;  %v202_v22 = vsub.f32 %v1186_v24, %v1242_v18  ;;  %239 = vadd.xlane.f32.xlu0 %v238_v7  ;;  %242 = vadd.xlane.f32.xlu1 %v241_v19  ;;  %v244_v23 = vsel %vm150_vm0, %v995_v15, 0.0  ;;  %v1292_v15 = vld [vmem:[%s1666_s1 + $0x10] sm:$0xff] }
  0xaa   :  { %1006 = vpow2.f32 %v225_v14  ;;  %v385_v14 = vld [vmem:[#allocation2] sm:$0xff]  ;;  %vm335_vm4 = vcmp.eq.s32.totalorder %v1292_v15, 0 }
  0xab   :  { %v997_v25 = vpop.eup %996  ;;  %v227_v28 = vmul.f32 1.442695, %v202_v22 }
  0xac   :  { %v999_v29 = vpop.eup %998  ;;  %v247_v30 = vsel %vm150_vm0, %v997_v25, 0.0 }
  0xad   :  { %1008 = vpow2.f32 %v227_v28  ;;  %245 = vadd.xlane.f32.xlu0 %v244_v23  ;;  %248 = vadd.xlane.f32.xlu1 %v247_v30  ;;  %v250_v31 = vsel %vm150_vm0, %v999_v29, 0.0  ;;  %v1307_v29 = vld [vmem:[%s1666_s1 + $0x20] sm:$0xff] }
  0xae   :  { %vm337_vm6 = vcmp.eq.s32.totalorder %v1307_v29, 0 }
  0xaf   :  { %v1001_v34 = vpop.eup %1000 }
  0xb0   :  { %v1003_v35 = vpop.eup %1002  ;;  %v253_v36 = vsel %vm150_vm0, %v1001_v34, 0.0 }
  0xb1   :  { %251 = vadd.xlane.f32.xlu0 %v250_v31  ;;  %254 = vadd.xlane.f32.xlu1 %v253_v36  ;;  %v256_v37 = vsel %vm150_vm0, %v1003_v35, 0.0  ;;  %v387_v36 = vld [vmem:[#allocation2 + $0x10] sm:$0xff] }
  0xb3   :  { %v1005_v40 = vpop.eup %1004 }
  0xb4   :  { %v1007_v41 = vpop.eup %1006  ;;  %v259_v42 = vsel %vm150_vm0, %v1005_v40, 0.0  ;;  %v386_v40 = vld [vmem:[#allocation2 + $0x8] sm:$0xff] }
  0xb5   :  { %257 = vadd.xlane.f32.xlu0 %v256_v37  ;;  %260 = vadd.xlane.f32.xlu1 %v259_v42  ;;  %v262_v43 = vsel %vm150_vm0, %v1007_v41, 0.0  ;;  %v1317_v41 = vld [vmem:[%s1666_s1 + $0x18] sm:$0xff] }
  0xb6   :  { %vm336_vm7 = vcmp.eq.s32.totalorder %v1317_v41, 0 }
  0xb7   :  { %v1009_v46 = vpop.eup %1008 }
  0xb8   :  { %v265_v47 = vsel %vm150_vm0, %v1009_v46, 0.0 }
  0xb9   :  { %263 = vadd.xlane.f32.xlu0 %v262_v43  ;;  %266 = vadd.xlane.f32.xlu1 %v265_v47 }
 0x12e   :  { %v231_v49 = vpop.xlane.xlu1 %230 }
 0x12f   :  { %1010 = vlog2.f32 %v231_v49  ;;  %v1330_v49 = vld [vmem:[%s1666_s1 + $0x30] sm:$0xff] }
 0x130   :  { %vm339_vm8 = vcmp.eq.s32.totalorder %v1330_v49, 0 }
 0x132   :  { %v237_v50 = vpop.xlane.xlu1 %236  ;;  %v234_v51 = vpop.xlane.xlu0 %233 }
 0x133   :  { %1012 = vlog2.f32 %v237_v50 }
 0x134   :  { %1014 = vlog2.f32 %v234_v51 }
 0x136   :  { %v243_v53 = vpop.xlane.xlu1 %242  ;;  %v240_v55 = vpop.xlane.xlu0 %239 }
 0x137   :  { %1016 = vlog2.f32 %v243_v53 }
 0x138   :  { %1018 = vlog2.f32 %v240_v55 }
 0x139   :  { %v1011_v56 = vpop.eup %1010 }
 0x13a   :  { %v269_v57 = vmul.f32 0.6931472, %v1011_v56  ;;  %v249_v58 = vpop.xlane.xlu1 %248  ;;  %v246_v59 = vpop.xlane.xlu0 %245 }
 0x13b   :  { %1020 = vlog2.f32 %v249_v58 }
 0x13c   :  { %v294_v61 = vadd.f32 %v269_v57, %v1190_v26  ;;  %1022 = vlog2.f32 %v246_v59  ;;  %v1297_v26 = vld [vmem:[%s1666_s1 + $0x8] sm:$0xff] }
 0x13d   :  { %v1013_v63 = vpop.eup %1012  ;;  %vm334_vm5 = vcmp.eq.s32.totalorder %v1297_v26, 0 }
 0x13e   :  { %v1015_v4 = vpop.eup %1014  ;;  %v273_v6 = vmul.f32 0.6931472, %v1013_v63  ;;  %v255_v7 = vpop.xlane.xlu1 %254  ;;  %v307_v11 = vsub.f32 %v1102_v0, %v294_v61  ;;  %v388_v61 = vld [vmem:[#allocation2 + $0x18] sm:$0xff]  ;;  %v1339_v63 = vld [vmem:[%s1666_s1 + $0x28] sm:$0xff] }
 0x13f   :  { %v252_v10 = vpop.xlane.xlu0 %251  ;;  %v271_v19 = vmul.f32 0.6931472, %v1015_v4  ;;  %1024 = vlog2.f32 %v255_v7  ;;  %vm338_vm9 = vcmp.eq.s32.totalorder %v1339_v63, 0 }
 0x140   :  { %v296_v22 = vadd.f32 %v273_v6, %v1192_v27  ;;  %1026 = vlog2.f32 %v252_v10  ;;  %v398_v23 = vsel %vm333_vm2, %v307_v11, 0.0  ;;  %582 = vrot.lane.b32.xlu0 %v307_v11, %s1079_s12 }
 0x141   :  { %v1017_v0 = vpop.eup %1016  ;;  %v295_v25 = vadd.f32 %v271_v19, %v1198_v32  ;;  %v411_v28 = vadd.f32 %v398_v23, %v385_v14  ;;  %v391_v23 = vld [vmem:[#allocation2 + $0x30] sm:$0xff] }
 0x142   :  { %v1019_v27 = vpop.eup %1018  ;;  %v277_v30 = vmul.f32 0.6931472, %v1017_v0  ;;  %v261_v31 = vpop.xlane.xlu1 %260  ;;  %v309_v35 = vsub.f32 %v1107_v1, %v296_v22 }
 0x143   :  { %v258_v34 = vpop.xlane.xlu0 %257  ;;  %v275_v37 = vmul.f32 0.6931472, %v1019_v27  ;;  %425 = vst.msk [vmem:[#allocation2] sm:$0xff] %vm424_vm3, %v411_v28  ;;  %1028 = vlog2.f32 %v261_v31  ;;  %v308_v32 = vsub.f32 %v1112_v2, %v295_v25  ;;  %v390_v28 = vld [vmem:[#allocation2 + $0x28] sm:$0xff]  ;;  %v1363_v27 = vld [vmem:[%s1666_s1 + $0x38] sm:$0xff] }
 0x144   :  { %v298_v42 = vadd.f32 %v277_v30, %v1206_v38  ;;  %1030 = vlog2.f32 %v258_v34  ;;  %v400_v1 = vsel %vm335_vm4, %v309_v35, 0.0  ;;  %v94_v38 = vlaneseq }
 0x145   :  { %v1021_v43 = vpop.eup %1020  ;;  %v297_v46 = vadd.f32 %v275_v37, %v1200_v33  ;;  %584 = vrot.lane.b32.xlu1 %v308_v32, %s1079_s12  ;;  %v399_v2 = vsel %vm334_vm5, %v308_v32, 0.0  ;;  %v413_v47 = vadd.f32 %v400_v1, %v387_v36  ;;  %v389_v33 = vld [vmem:[#allocation2 + $0x20] sm:$0xff]  ;;  %v1383_v36 = vld [vmem:[%s1666_s1 + $0x48] sm:$0xff]  ;;  %vm340_vm11 = vcmp.eq.s32.totalorder %v1363_v27, 0 }
 0x146   :  { %v1023_v50 = vpop.eup %1022  ;;  %v281_v51 = vmul.f32 0.6931472, %v1021_v43  ;;  %v412_v53 = vadd.f32 %v399_v2, %v386_v40  ;;  %v267_v55 = vpop.xlane.xlu1 %266  ;;  %v311_v57 = vsub.f32 %v1130_v8, %v298_v42  ;;  %v95_v11 = vshrl.u32 %v94_v38, 7  ;;  %v393_v42 = vld [vmem:[#allocation2 + $0x40] sm:$0xff]  ;;  %v392_v2 = vld [vmem:[#allocation2 + $0x38] sm:$0xff] }
 0x147   :  { %v264_v56 = vpop.xlane.xlu0 %263  ;;  %v279_v58 = vmul.f32 0.6931472, %v1023_v50  ;;  %1032 = vlog2.f32 %v267_v55  ;;  %427 = vst.msk [vmem:[#allocation2 + $0x10] sm:$0xff] %vm424_vm3, %v413_v47  ;;  %v310_v59 = vsub.f32 %v1121_v5, %v297_v46  ;;  %v1394_v47 = vld [vmem:[%s1666_s1 + $0x60] sm:$0xff]  ;;  %vm342_vm13 = vcmp.eq.s32.totalorder %v1383_v36, 0 }
 0x148   :  { %v300_v4 = vadd.f32 %v281_v51, %v1214_v44  ;;  %426 = vst.msk [vmem:[#allocation2 + $0x8] sm:$0xff] %vm424_vm3, %v412_v53  ;;  %1034 = vlog2.f32 %v264_v56  ;;  %590 = vrot.lane.b32.xlu0 %v311_v57, %s1079_s12  ;;  %v402_v8 = vsel %vm337_vm6, %v311_v57, 0.0  ;;  %v1354_v44 = vld [vmem:[%s1666_s1 + $0x40] sm:$0xff]  ;;  %v1385_v37 = vadd.s32 96, %v95_v11  ;;  %v395_v57 = vld [vmem:[#allocation2 + $0x50] sm:$0xff] }
 0x149   :  { %v1025_v6 = vpop.eup %1024  ;;  %v299_v5 = vadd.f32 %v279_v58, %v1208_v39  ;;  %v415_v7 = vadd.f32 %v402_v8, %v389_v33  ;;  %586 = vrot.lane.b32.xlu1 %v309_v35, %s1079_s12  ;;  %v401_v10 = vsel %vm336_vm7, %v310_v59, 0.0  ;;  %vm341_vm10 = vcmp.eq.s32.totalorder %v1354_v44, 0  ;;  %v397_v11 = vld [vmem:[#allocation2 + $0x60] sm:$0xff] }
 0x14a   :  { %v1027_v14 = vpop.eup %1026  ;;  %v285_v19 = vmul.f32 0.6931472, %v1025_v6  ;;  %v313_v22 = vsub.f32 %v1144_v12, %v300_v4  ;;  %v414_v0 = vadd.f32 %v401_v10, %v388_v61  ;;  %vm136_vm14 = vcmp.lt.s32.totalorder %v1385_v37, 100  ;;  %v1415_v61 = vld [vmem:[%s1666_s1 + $0x58] sm:$0xff] }
 0x14b   :  { %v283_v39 = vmul.f32 0.6931472, %v1027_v14  ;;  %429 = vst.msk [vmem:[#allocation2 + $0x20] sm:$0xff] %vm424_vm3, %v415_v7  ;;  %v312_v25 = vsub.f32 %v1135_v9, %v299_v5  ;;  %vm345_vm15 = vcmp.eq.s32.totalorder %v1394_v47, 0  ;;  %v909_v8 = vsel %vm335_vm4, 1.0, %v1078_v48 }
 0x14c   :  { %v302_v30 = vadd.f32 %v285_v19, %v1222_v52  ;;  %594 = vrot.lane.b32.xlu0 %v313_v22, %s1079_s12  ;;  %v404_v12 = vsel %vm339_vm8, %v313_v22, 0.0  ;;  %428 = vst.msk [vmem:[#allocation2 + $0x18] sm:$0xff] %vm424_vm3, %v414_v0  ;;  %v1378_v52 = vld [vmem:[%s1666_s1 + $0x50] sm:$0xff]  ;;  %vm1436_vm0 = vmand %vm136_vm14, %vm345_vm15  ;;  %vm344_vm4 = vcmp.eq.s32.totalorder %v1415_v61, 0  ;;  %v396_v19 = vld [vmem:[#allocation2 + $0x58] sm:$0xff]  ;;  %v913_v0 = vsel %vm339_vm8, 1.0, %v1078_v48 }
 0x14d   :  { %v1029_v31 = vpop.eup %1028  ;;  %v301_v9 = vadd.f32 %v283_v39, %v1216_v45  ;;  %v417_v34 = vadd.f32 %v404_v12, %v391_v23  ;;  %588 = vrot.lane.b32.xlu1 %v310_v59, %s1079_s12  ;;  %v403_v35 = vsel %vm338_vm9, %v312_v25, 0.0  ;;  %vm343_vm12 = vcmp.eq.s32.totalorder %v1378_v52, 0  ;;  %v394_v59 = vld [vmem:[#allocation2 + $0x48] sm:$0xff]  ;;  %s1080_s1 = smov 1  }
 0x14e   :  { %v1031_v32 = vpop.eup %1030  ;;  %v289_v45 = vmul.f32 0.6931472, %v1029_v31  ;;  %v315_v40 = vsub.f32 %v1158_v16, %v302_v30  ;;  %v416_v1 = vadd.f32 %v403_v35, %v390_v28  ;;  %v907_v28 = vsel %vm333_vm2, 1.0, %v1078_v48 }
 0x14f   :  { %v287_v43 = vmul.f32 0.6931472, %v1031_v32  ;;  %431 = vst.msk [vmem:[#allocation2 + $0x30] sm:$0xff] %vm424_vm3, %v417_v34  ;;  %v314_v46 = vsub.f32 %v1149_v13, %v301_v9  ;;  %v908_v30 = vsel %vm334_vm5, 1.0, %v1078_v48  ;;  %v915_v9 = vsel %vm341_vm10, 1.0, %v1078_v48 }
 0x150   :  { %v304_v38 = vadd.f32 %v289_v45, %v1232_v62  ;;  %598 = vrot.lane.b32.xlu0 %v315_v40, %s1079_s12  ;;  %v406_v16 = vsel %vm341_vm10, %v315_v40, 0.0  ;;  %430 = vst.msk [vmem:[#allocation2 + $0x28] sm:$0xff] %vm424_vm3, %v416_v1  ;;  %v939_v31 = vpack.i.bf16 %v908_v30, %v907_v28  ;;  %v916_v34 = vsel %vm342_vm13, 1.0, %v1078_v48 }
 0x151   :  { %v1033_v13 = vpop.eup %1032  ;;  %v303_v50 = vadd.f32 %v287_v43, %v1225_v54  ;;  %v419_v51 = vadd.f32 %v406_v16, %v393_v42  ;;  %592 = vrot.lane.b32.xlu1 %v312_v25, %s1079_s12  ;;  %v405_v62 = vsel %vm340_vm11, %v314_v46, 0.0  ;;  %v911_v35 = vsel %vm337_vm6, 1.0, %v1078_v48 }
 0x152   :  { %v1035_v53 = vpop.eup %1034  ;;  %v293_v55 = vmul.f32 0.6931472, %v1033_v13  ;;  %v317_v56 = vsub.f32 %v1172_v20, %v304_v38  ;;  %v418_v33 = vadd.f32 %v405_v62, %v392_v2  ;;  %v912_v32 = vsel %vm338_vm9, 1.0, %v1078_v48 }
 0x153   :  { %v291_v58 = vmul.f32 0.6931472, %v1035_v53  ;;  %433 = vst.msk [vmem:[#allocation2 + $0x40] sm:$0xff] %vm424_vm3, %v419_v51  ;;  %v316_v54 = vsub.f32 %v1163_v17, %v303_v50  ;;  %vm359_vm2 = vcmp.eq.s32.totalorder %v1284_v60, 1  ;;  %v959_v45 = vpack.i.bf16 %v916_v34, %v915_v9  ;;  %v438_v34 = vld [vmem:[#allocation2] sm:$0xff] }
 0x154   :  { %v306_v4 = vadd.f32 %v293_v55, %v1242_v18  ;;  %602 = vrot.lane.b32.xlu0 %v317_v56, %s1079_s12  ;;  %v408_v20 = vsel %vm343_vm12, %v317_v56, 0.0  ;;  %432 = vst.msk [vmem:[#allocation2 + $0x38] sm:$0xff] %vm424_vm3, %v418_v33  ;;  %v910_v18 = vsel %vm336_vm7, 1.0, %v1078_v48  ;;  %v949_v40 = vpack.i.bf16 %v912_v32, %v911_v35  ;;  %v439_v35 = vld [vmem:[#allocation2 + $0x8] sm:$0xff] }
 0x155   :  { %v305_v17 = vadd.f32 %v291_v58, %v1235_v3  ;;  %v421_v6 = vadd.f32 %v408_v20, %v395_v57  ;;  %596 = vrot.lane.b32.xlu1 %v314_v46, %s1079_s12  ;;  %v407_v5 = vsel %vm342_vm13, %v316_v54, 0.0  ;;  %v944_v22 = vpack.i.bf16 %v910_v18, %v909_v8 }
 0x156   :  { %v319_v3 = vsub.f32 %v1186_v24, %v306_v4  ;;  %v420_v10 = vadd.f32 %v407_v5, %v394_v59  ;;  %v920_v42 = vsel %vm359_vm2, 1.0, %v1078_v48  ;;  %v917_v43 = vsel %vm343_vm12, 1.0, %v1078_v48  ;;  %v444_v30 = vld [vmem:[#allocation2 + $0x30] sm:$0xff] }
 0x157   :  { %435 = vst.msk [vmem:[#allocation2 + $0x50] sm:$0xff] %vm424_vm3, %v421_v6  ;;  %v318_v14 = vsub.f32 %v1177_v21, %v305_v17  ;;  %v914_v21 = vsel %vm340_vm11, 1.0, %v1078_v48  ;;  %v918_v46 = vsel %vm344_vm4, 1.0, %v1078_v48  ;;  %vm363_vm5 = vcmp.eq.s32.totalorder %v1307_v29, 1 }
 0x158   :  { %606 = vrot.lane.b32.xlu0 %v319_v3, %s1079_s12  ;;  %434 = vst.msk [vmem:[#allocation2 + $0x48] sm:$0xff] %vm424_vm3, %v420_v10  ;;  %v410_v23 = vsel %vm1436_vm0, %v319_v3, 0.0  ;;  %v954_v12 = vpack.i.bf16 %v914_v21, %v913_v0  ;;  %vm364_vm6 = vcmp.eq.s32.totalorder %v1339_v63, 1  ;;  %v964_v38 = vpack.i.bf16 %v918_v46, %v917_v43 }
 0x159   :  { %600 = vrot.lane.b32.xlu1 %v316_v54, %s1079_s12  ;;  %v409_v24 = vsel %vm344_vm4, %v318_v14, 0.0  ;;  %v423_v39 = vadd.f32 %v410_v23, %v397_v11  ;;  %v924_v16 = vsel %vm363_vm5, 1.0, %v1078_v48  ;;  %v925_v13 = vsel %vm364_vm6, 1.0, %v1078_v48  ;;  %v440_v23 = vld [vmem:[#allocation2 + $0x10] sm:$0xff] }
 0x15a   :  { %v422_v25 = vadd.f32 %v409_v24, %v396_v19  ;;  %vm361_vm7 = vcmp.eq.s32.totalorder %v1292_v15, 1  ;;  %vm362_vm8 = vcmp.eq.s32.totalorder %v1317_v41, 1  ;;  %v979_v50 = vpack.i.bf16 %v925_v13, %v924_v16  ;;  %v441_v24 = vld [vmem:[#allocation2 + $0x18] sm:$0xff]  ;;  %v446_v43 = vld [vmem:[#allocation2 + $0x40] sm:$0xff] }
 0x15b   :  { %437 = vst.msk [vmem:[#allocation2 + $0x60] sm:$0xff] %vm424_vm3, %v423_v39  ;;  %v919_v51 = vsel %vm1436_vm0, 1.0, %v1078_v48  ;;  %v922_v62 = vsel %vm361_vm7, 1.0, %v1078_v48  ;;  %v923_v53 = vsel %vm362_vm8, 1.0, %v1078_v48  ;;  %vm365_vm9 = vcmp.eq.s32.totalorder %v1330_v49, 1  ;;  %v442_v16 = vld [vmem:[#allocation2 + $0x20] sm:$0xff] }
 0x15c   :  { %436 = vst.msk [vmem:[#allocation2 + $0x58] sm:$0xff] %vm424_vm3, %v422_v25  ;;  %945 = vrot.lane.b32.xlu0 %v944_v22, %s1080_s1  ;;  %vm360_vm3 = vcmp.eq.s32.totalorder %v1297_v26, 1  ;;  %v974_v55 = vpack.i.bf16 %v923_v53, %v922_v62  ;;  %v926_v29 = vsel %vm365_vm9, 1.0, %v1078_v48  ;;  %vm366_vm10 = vcmp.eq.s32.totalorder %v1363_v27, 1 }
 0x15d   :  { %604 = vrot.lane.b32.xlu1 %v318_v14, %s1079_s12  ;;  %v921_v1 = vsel %vm360_vm3, 1.0, %v1078_v48  ;;  %vm367_vm11 = vcmp.eq.s32.totalorder %v1354_v44, 1  ;;  %vm368_vm12 = vcmp.eq.s32.totalorder %v1383_v36, 1  ;;  %vm369_vm13 = vcmp.eq.s32.totalorder %v1378_v52, 1  ;;  %v443_v44 = vld [vmem:[#allocation2 + $0x28] sm:$0xff] }
 0x15e   :  { %v969_v2 = vpack.i.bf16 %v921_v1, %v920_v42  ;;  %vm370_vm15 = vcmp.eq.s32.totalorder %v1415_v61, 1  ;;  %vm371_vm0 = vcmp.eq.s32.totalorder %v1394_v47, 1  ;;  %vm542_vm4 = vcmask 15368   ;;  %v448_v53 = vld [vmem:[#allocation2 + $0x50] sm:$0xff] }
 0x15f   :  { %v927_v25 = vsel %vm366_vm10, 1.0, %v1078_v48  ;;  %v929_v42 = vsel %vm368_vm12, 1.0, %v1078_v48  ;;  %v447_v46 = vld [vmem:[#allocation2 + $0x48] sm:$0xff] }
 0x160   :  { %955 = vrot.lane.b32.xlu0 %v954_v12, %s1080_s1  ;;  %v445_v12 = vld [vmem:[#allocation2 + $0x38] sm:$0xff] }
 0x161   :  { %940 = vrot.lane.b32.xlu1 %v939_v31, %s1080_s1 }
 0x164   :  { %960 = vrot.lane.b32.xlu0 %v959_v45, %s1080_s1 }
 0x165   :  { %950 = vrot.lane.b32.xlu1 %v949_v40, %s1080_s1  ;;  %v928_v40 = vsel %vm367_vm11, 1.0, %v1078_v48 }
 0x168   :  { %970 = vrot.lane.b32.xlu0 %v969_v2, %s1081_s5 }
 0x169   :  { %965 = vrot.lane.b32.xlu1 %v964_v38, %s1080_s1 }
 0x16c   :  { %980 = vrot.lane.b32.xlu0 %v979_v50, %s1081_s5  ;;  %v930_v50 = vsel %vm369_vm13, 1.0, %v1078_v48 }
 0x16d   :  { %514 = vrot.lane.b32.xlu1 %v919_v51, %s1080_s1  ;;  %v931_v51 = vsel %vm370_vm15, 1.0, %v1078_v48 }
 0x171   :  { %975 = vrot.lane.b32.xlu1 %v974_v55, %s1081_s5  ;;  %v449_v55 = vld [vmem:[#allocation2 + $0x58] sm:$0xff] }
 0x1b2   :  { %v583_v56 = vpop.permute.xlu0 %582 }
 0x1b3   :  { %v621_v57 = vsel %vm359_vm2, %v583_v56, 0.0  ;;  %vm1564_vm2 = vmand %vm136_vm14, %vm371_vm0  ;;  %vm699_vm14 = vcmask 23568  }
 0x1b4   :  { %647 = vrot.lane.b32.xlu1 %v621_v57, %s1082_s6  ;;  %v932_v61 = vsel %vm1564_vm2, 1.0, %v1078_v48 }
 0x1b7   :  { %v585_v33 = vpop.permute.xlu1 %584 }
 0x1b8   :  { %v622_v58 = vsel %vm360_vm3, %v585_v33, 0.0  ;;  %v450_v33 = vld [vmem:[#allocation2 + $0x60] sm:$0xff]  ;;  %vm817_vm3 = vcmask 31768  }
 0x1b9   :  { %649 = vrot.lane.b32.xlu0 %v622_v58, %s1082_s6 }
 0x1ba   :  { %v591_v54 = vpop.permute.xlu0 %590 }
 0x1bb   :  { %v587_v59 = vpop.permute.xlu1 %586  ;;  %v625_v4 = vsel %vm363_vm5, %v591_v54, 0.0  ;;  %vm879_vm5 = vcmask 24576  }
 0x1bc   :  { %v623_v20 = vsel %vm361_vm7, %v587_v59, 0.0 }
 0x1bd   :  { %655 = vrot.lane.b32.xlu0 %v625_v4, %s1082_s6  ;;  %651 = vrot.lane.b32.xlu1 %v623_v20, %s1082_s6 }
 0x1be   :  { %v595_v60 = vpop.permute.xlu0 %594 }
 0x1bf   :  { %v589_v8 = vpop.permute.xlu1 %588  ;;  %v627_v18 = vsel %vm365_vm9, %v595_v60, 0.0 }
 0x1c0   :  { %v624_v26 = vsel %vm362_vm8, %v589_v8, 0.0 }
 0x1c1   :  { %653 = vrot.lane.b32.xlu1 %v624_v26, %s1082_s6 }
 0x1c2   :  { %v599_v17 = vpop.permute.xlu0 %598 }
 0x1c3   :  { %v593_v6 = vpop.permute.xlu1 %592  ;;  %v629_v3 = vsel %vm367_vm11, %v599_v17, 0.0 }
 0x1c4   :  { %v626_v15 = vsel %vm364_vm6, %v593_v6, 0.0 }
 0x1c5   :  { %657 = vrot.lane.b32.xlu0 %v626_v15, %s1082_s6  ;;  %777 = vrot.lane.b32.xlu1 %v926_v29, %s1081_s5 }
 0x1c6   :  { %v603_v5 = vpop.permute.xlu0 %602 }
 0x1c7   :  { %v597_v41 = vpop.permute.xlu1 %596  ;;  %v631_v19 = vsel %vm369_vm13, %v603_v5, 0.0 }
 0x1c8   :  { %v628_v49 = vsel %vm366_vm10, %v597_v41, 0.0 }
 0x1c9   :  { %661 = vrot.lane.b32.xlu0 %v628_v49, %s1082_s6  ;;  %659 = vrot.lane.b32.xlu1 %v627_v18, %s1082_s6 }
 0x1ca   :  { %v607_v63 = vpop.permute.xlu0 %606 }
 0x1cb   :  { %v601_v7 = vpop.permute.xlu1 %600  ;;  %v633_v28 = vsel %vm1564_vm2, %v607_v63, 0.0 }
 0x1cc   :  { %v630_v10 = vsel %vm368_vm12, %v601_v7, 0.0 }
 0x1cd   :  { %663 = vrot.lane.b32.xlu0 %v629_v3, %s1082_s6  ;;  %665 = vrot.lane.b32.xlu1 %v630_v10, %s1082_s6 }
 0x1ce   :  { %v946_v11 = vpop.permute.xlu0 %945 }
 0x1cf   :  { %v605_v14 = vpop.permute.xlu1 %604  ;;  %v1036_v21 = vadd.low.f32.bf16 %v440_v23, %v946_v11  ;;  %v1037_v39 = vadd.high.f32.bf16 %v441_v24, %v946_v11 }
 0x1d0   :  { %v632_v22 = vsel %vm370_vm15, %v605_v14, 0.0 }
 0x1d1   :  { %669 = vrot.lane.b32.xlu0 %v632_v22, %s1082_s6  ;;  %667 = vrot.lane.b32.xlu1 %v631_v19, %s1082_s6  ;;  %545 = vst.msk [vmem:[#allocation2 + $0x10] sm:$0xff] %vm542_vm4, %v1036_v21  ;;  %546 = vst.msk [vmem:[#allocation2 + $0x18] sm:$0xff] %vm542_vm4, %v1037_v39 }
 0x1d2   :  { %v956_v47 = vpop.permute.xlu0 %955 }
 0x1d3   :  { %v941_v37 = vpop.permute.xlu1 %940  ;;  %v1038_v31 = vadd.low.f32.bf16 %v444_v30, %v956_v47  ;;  %v1039_v9 = vadd.high.f32.bf16 %v445_v12, %v956_v47 }
 0x1d4   :  { %v1040_v27 = vadd.low.f32.bf16 %v438_v34, %v941_v37  ;;  %v1041_v32 = vadd.high.f32.bf16 %v439_v35, %v941_v37 }
 0x1d5   :  { %671 = vrot.lane.b32.xlu0 %v633_v28, %s1082_s6  ;;  %779 = vrot.lane.b32.xlu1 %v927_v25, %s1081_s5  ;;  %549 = vst.msk [vmem:[#allocation2 + $0x30] sm:$0xff] %vm542_vm4, %v1038_v31  ;;  %550 = vst.msk [vmem:[#allocation2 + $0x38] sm:$0xff] %vm542_vm4, %v1039_v9 }
 0x1d6   :  { %v961_v45 = vpop.permute.xlu0 %960  ;;  %543 = vst.msk [vmem:[#allocation2] sm:$0xff] %vm542_vm4, %v1040_v27  ;;  %544 = vst.msk [vmem:[#allocation2 + $0x8] sm:$0xff] %vm542_vm4, %v1041_v32 }
 0x1d7   :  { %v951_v1 = vpop.permute.xlu1 %950  ;;  %v1042_v2 = vadd.low.f32.bf16 %v446_v43, %v961_v45  ;;  %v1043_v38 = vadd.high.f32.bf16 %v447_v46, %v961_v45 }
 0x1d8   :  { %v1044_v36 = vadd.low.f32.bf16 %v442_v16, %v951_v1  ;;  %v1045_v13 = vadd.high.f32.bf16 %v443_v44, %v951_v1  ;;  %v558_v5 = vld [vmem:[#allocation2 + $0x10] sm:$0xff]  ;;  %v559_v3 = vld [vmem:[#allocation2 + $0x18] sm:$0xff] }
 0x1d9   :  { %781 = vrot.lane.b32.xlu0 %v928_v40, %s1081_s5  ;;  %783 = vrot.lane.b32.xlu1 %v929_v42, %s1081_s5  ;;  %551 = vst.msk [vmem:[#allocation2 + $0x40] sm:$0xff] %vm542_vm4, %v1042_v2  ;;  %552 = vst.msk [vmem:[#allocation2 + $0x48] sm:$0xff] %vm542_vm4, %v1043_v38 }
 0x1da   :  { %547 = vst.msk [vmem:[#allocation2 + $0x20] sm:$0xff] %vm542_vm4, %v1044_v36  ;;  %548 = vst.msk [vmem:[#allocation2 + $0x28] sm:$0xff] %vm542_vm4, %v1045_v13  ;;  %v971_v54 = vpop.permute.xlu0 %970 }
 0x1db   :  { %v966_v62 = vpop.permute.xlu1 %965 }
 0x1dc   :  { %v1046_v52 = vadd.low.f32.bf16 %v448_v53, %v966_v62  ;;  %v1047_v56 = vadd.high.f32.bf16 %v449_v55, %v966_v62  ;;  %v563_v37 = vld [vmem:[#allocation2 + $0x38] sm:$0xff]  ;;  %v562_v30 = vld [vmem:[#allocation2 + $0x30] sm:$0xff] }
 0x1dd   :  { %785 = vrot.lane.b32.xlu0 %v930_v50, %s1081_s5  ;;  %787 = vrot.lane.b32.xlu1 %v931_v51, %s1081_s5  ;;  %v556_v60 = vld [vmem:[#allocation2] sm:$0xff]  ;;  %v557_v26 = vld [vmem:[#allocation2 + $0x8] sm:$0xff] }
 0x1de   :  { %553 = vst.msk [vmem:[#allocation2 + $0x50] sm:$0xff] %vm542_vm4, %v1046_v52  ;;  %554 = vst.msk [vmem:[#allocation2 + $0x58] sm:$0xff] %vm542_vm4, %v1047_v56  ;;  %v1610_v4 = vpop.permute.xlu0 %980 }
 0x1df   :  { %v515_v57 = vpop.permute.xlu1 %514 }
 0x1e0   :  { %v541_v58 = vadd.f32 %v515_v57, %v450_v33  ;;  %v564_v27 = vld [vmem:[#allocation2 + $0x40] sm:$0xff]  ;;  %v565_v45 = vld [vmem:[#allocation2 + $0x48] sm:$0xff] }
 0x1e1   :  { %789 = vrot.lane.b32.xlu0 %v932_v61, %s1081_s5  ;;  %v560_v6 = vld [vmem:[#allocation2 + $0x20] sm:$0xff]  ;;  %v561_v22 = vld [vmem:[#allocation2 + $0x28] sm:$0xff] }
 0x1e2   :  { %555 = vst.msk [vmem:[#allocation2 + $0x60] sm:$0xff] %vm542_vm4, %v541_v58 }
 0x1e3   :  { %v976_v59 = vpop.permute.xlu1 %975 }
 0x1e5   :  { %v567_v44 = vld [vmem:[#allocation2 + $0x58] sm:$0xff]  ;;  %v566_v13 = vld [vmem:[#allocation2 + $0x50] sm:$0xff] }
 0x1e9   :  { %v568_v57 = vld [vmem:[#allocation2 + $0x60] sm:$0xff] }
 0x226   :  { %v648_v20 = vpop.permute.xlu1 %647 }
 0x227   :  { %v686_v8 = vadd.f32 %v648_v20, %v556_v60 }
 0x229   :  { %700 = vst.msk [vmem:[#allocation2] sm:$0xff] %vm699_vm14, %v686_v8 }
 0x22b   :  { %v650_v48 = vpop.permute.xlu0 %649 }
 0x22c   :  { %v687_v17 = vadd.f32 %v650_v48, %v557_v26 }
 0x22e   :  { %701 = vst.msk [vmem:[#allocation2 + $0x8] sm:$0xff] %vm699_vm14, %v687_v17 }
 0x22f   :  { %v656_v29 = vpop.permute.xlu0 %655  ;;  %v652_v15 = vpop.permute.xlu1 %651 }
 0x230   :  { %v713_v41 = vld [vmem:[#allocation2] sm:$0xff]  ;;  %v690_v18 = vadd.f32 %v656_v29, %v560_v6  ;;  %v688_v49 = vadd.f32 %v652_v15, %v558_v5 }
 0x231   :  { %v1048_v63 = vadd.low.f32.bf16 %v713_v41, %v971_v54 }
 0x232   :  { %704 = vst.msk [vmem:[#allocation2 + $0x20] sm:$0xff] %vm699_vm14, %v690_v18  ;;  %702 = vst.msk [vmem:[#allocation2 + $0x10] sm:$0xff] %vm699_vm14, %v688_v49 }
 0x233   :  { %818 = vst.msk [vmem:[#allocation2] sm:$0xff] %vm817_vm3, %v1048_v63  ;;  %v654_v7 = vpop.permute.xlu1 %653 }
 0x234   :  { %v689_v10 = vadd.f32 %v654_v7, %v559_v3 }
 0x235   :  { %v714_v11 = vld [vmem:[#allocation2 + $0x8] sm:$0xff] }
 0x236   :  { %v1049_v14 = vadd.high.f32.bf16 %v714_v11, %v971_v54  ;;  %703 = vst.msk [vmem:[#allocation2 + $0x18] sm:$0xff] %vm699_vm14, %v689_v10 }
 0x237   :  { %v658_v19 = vpop.permute.xlu0 %657  ;;  %v778_v23 = vpop.permute.xlu1 %777 }
 0x238   :  { %819 = vst.msk [vmem:[#allocation2 + $0x8] sm:$0xff] %vm817_vm3, %v1049_v14  ;;  %v691_v24 = vadd.f32 %v658_v19, %v561_v22 }
 0x239   :  { %v717_v0 = vld [vmem:[#allocation2 + $0x20] sm:$0xff]  ;;  %v715_v21 = vld [vmem:[#allocation2 + $0x10] sm:$0xff] }
 0x23a   :  { %v1050_v39 = vadd.low.f32.bf16 %v717_v0, %v1610_v4  ;;  %v1051_v47 = vadd.low.f32.bf16 %v715_v21, %v976_v59  ;;  %705 = vst.msk [vmem:[#allocation2 + $0x28] sm:$0xff] %vm699_vm14, %v691_v24  ;;  %v834_v46 = vld [vmem:[#allocation2] sm:$0xff] }
 0x23b   :  { %v662_v25 = vpop.permute.xlu0 %661  ;;  %v660_v28 = vpop.permute.xlu1 %659  ;;  %v848_v53 = vsel %vm80_vm1, %v834_v46, 0.0 }
 0x23c   :  { %822 = vst.msk [vmem:[#allocation2 + $0x20] sm:$0xff] %vm817_vm3, %v1050_v39  ;;  %820 = vst.msk [vmem:[#allocation2 + $0x10] sm:$0xff] %vm817_vm3, %v1051_v47  ;;  %v693_v12 = vadd.f32 %v662_v25, %v563_v37  ;;  %v692_v31 = vadd.f32 %v660_v28, %v562_v30 }
 0x23d   :  { %v716_v9 = vld [vmem:[#allocation2 + $0x18] sm:$0xff] }
 0x23e   :  { %v1052_v34 = vadd.high.f32.bf16 %v716_v9, %v976_v59  ;;  %707 = vst.msk [vmem:[#allocation2 + $0x38] sm:$0xff] %vm699_vm14, %v693_v12  ;;  %706 = vst.msk [vmem:[#allocation2 + $0x30] sm:$0xff] %vm699_vm14, %v692_v31 }
 0x23f   :  { %v664_v35 = vpop.permute.xlu0 %663  ;;  %v666_v32 = vpop.permute.xlu1 %665  ;;  %v835_v40 = vld [vmem:[#allocation2 + $0x8] sm:$0xff] }
 0x240   :  { %821 = vst.msk [vmem:[#allocation2 + $0x18] sm:$0xff] %vm817_vm3, %v1052_v34  ;;  %v694_v42 = vadd.f32 %v664_v35, %v564_v27  ;;  %v695_v1 = vadd.f32 %v666_v32, %v565_v45  ;;  %v849_v38 = vsel %vm80_vm1, %v835_v40, 0.0 }
 0x241   :  { %v718_v43 = vld [vmem:[#allocation2 + $0x28] sm:$0xff]  ;;  %v850_v56 = vadd.f32 %v849_v38, %v848_v53 }
 0x242   :  { %v1053_v2 = vadd.high.f32.bf16 %v718_v43, %v1610_v4  ;;  %708 = vst.msk [vmem:[#allocation2 + $0x40] sm:$0xff] %vm699_vm14, %v694_v42  ;;  %709 = vst.msk [vmem:[#allocation2 + $0x48] sm:$0xff] %vm699_vm14, %v695_v1 }
 0x243   :  { %v670_v16 = vpop.permute.xlu0 %669  ;;  %v668_v36 = vpop.permute.xlu1 %667  ;;  %v836_v50 = vld [vmem:[#allocation2 + $0x10] sm:$0xff]  ;;  %v838_v4 = vld [vmem:[#allocation2 + $0x20] sm:$0xff] }
 0x244   :  { %823 = vst.msk [vmem:[#allocation2 + $0x28] sm:$0xff] %vm817_vm3, %v1053_v2  ;;  %v697_v51 = vadd.f32 %v670_v16, %v567_v44  ;;  %v696_v62 = vadd.f32 %v668_v36, %v566_v13  ;;  %v851_v55 = vsel %vm80_vm1, %v836_v50, 0.0  ;;  %v855_v17 = vsel %vm80_vm1, %v838_v4, 0.0 }
 0x245   :  { %v719_v52 = vld [vmem:[#allocation2 + $0x30] sm:$0xff]  ;;  %v720_v54 = vld [vmem:[#allocation2 + $0x38] sm:$0xff]  ;;  %v852_v20 = vadd.f32 %v851_v55, %v850_v56 }
 0x246   :  { %v810_v61 = vadd.f32 %v778_v23, %v719_v52  ;;  %711 = vst.msk [vmem:[#allocation2 + $0x58] sm:$0xff] %vm699_vm14, %v697_v51  ;;  %710 = vst.msk [vmem:[#allocation2 + $0x50] sm:$0xff] %vm699_vm14, %v696_v62 }
 0x247   :  { %v672_v33 = vpop.permute.xlu0 %671  ;;  %v780_v58 = vpop.permute.xlu1 %779  ;;  %v837_v59 = vld [vmem:[#allocation2 + $0x18] sm:$0xff] }
 0x248   :  { %824 = vst.msk [vmem:[#allocation2 + $0x30] sm:$0xff] %vm817_vm3, %v810_v61  ;;  %v698_v60 = vadd.f32 %v672_v33, %v568_v57  ;;  %v811_v8 = vadd.f32 %v780_v58, %v720_v54  ;;  %v853_v48 = vsel %vm80_vm1, %v837_v59, 0.0 }
 0x249   :  { %v854_v26 = vadd.f32 %v853_v48, %v852_v20  ;;  %v721_v6 = vld [vmem:[#allocation2 + $0x40] sm:$0xff]  ;;  %v722_v5 = vld [vmem:[#allocation2 + $0x48] sm:$0xff] }
 0x24a   :  { %712 = vst.msk [vmem:[#allocation2 + $0x60] sm:$0xff] %vm699_vm14, %v698_v60 }
 0x24b   :  { %825 = vst.msk [vmem:[#allocation2 + $0x38] sm:$0xff] %vm817_vm3, %v811_v8  ;;  %v782_v29 = vpop.permute.xlu0 %781  ;;  %v784_v15 = vpop.permute.xlu1 %783  ;;  %v839_v41 = vld [vmem:[#allocation2 + $0x28] sm:$0xff]  ;;  %v856_v18 = vadd.f32 %v855_v17, %v854_v26 }
 0x24c   :  { %v812_v49 = vadd.f32 %v782_v29, %v721_v6  ;;  %v813_v63 = vadd.f32 %v784_v15, %v722_v5  ;;  %v857_v7 = vsel %vm80_vm1, %v839_v41, 0.0 }
 0x24d   :  { %v723_v10 = vld [vmem:[#allocation2 + $0x50] sm:$0xff]  ;;  %v724_v14 = vld [vmem:[#allocation2 + $0x58] sm:$0xff]  ;;  %v858_v22 = vadd.f32 %v857_v7, %v856_v18 }
 0x24e   :  { %826 = vst.msk [vmem:[#allocation2 + $0x40] sm:$0xff] %vm817_vm3, %v812_v49  ;;  %827 = vst.msk [vmem:[#allocation2 + $0x48] sm:$0xff] %vm817_vm3, %v813_v63 }
 0x24f   :  { %v786_v3 = vpop.permute.xlu0 %785  ;;  %v788_v11 = vpop.permute.xlu1 %787  ;;  %v840_v19 = vld [vmem:[#allocation2 + $0x30] sm:$0xff] }
 0x250   :  { %v814_v23 = vadd.f32 %v786_v3, %v723_v10  ;;  %v815_v24 = vadd.f32 %v788_v11, %v724_v14  ;;  %v859_v0 = vsel %vm80_vm1, %v840_v19, 0.0 }
 0x251   :  { %v860_v39 = vadd.f32 %v859_v0, %v858_v22  ;;  %v725_v37 = vld [vmem:[#allocation2 + $0x60] sm:$0xff] }
 0x252   :  { %v841_v21 = vld [vmem:[#allocation2 + $0x38] sm:$0xff]  ;;  %828 = vst.msk [vmem:[#allocation2 + $0x50] sm:$0xff] %vm817_vm3, %v814_v23  ;;  %829 = vst.msk [vmem:[#allocation2 + $0x58] sm:$0xff] %vm817_vm3, %v815_v24 }
 0x253   :  { %v861_v47 = vsel %vm80_vm1, %v841_v21, 0.0  ;;  %v790_v25 = vpop.permute.xlu0 %789 }
 0x254   :  { %v816_v28 = vadd.f32 %v790_v25, %v725_v37  ;;  %v862_v31 = vadd.f32 %v861_v47, %v860_v39 }
 0x255   :  { %v842_v30 = vld [vmem:[#allocation2 + $0x40] sm:$0xff]  ;;  %v843_v12 = vld [vmem:[#allocation2 + $0x48] sm:$0xff] }
 0x256   :  { %830 = vst.msk [vmem:[#allocation2 + $0x60] sm:$0xff] %vm817_vm3, %v816_v28  ;;  %v863_v9 = vsel %vm80_vm1, %v842_v30, 0.0  ;;  %v865_v35 = vsel %vm80_vm1, %v843_v12, 0.0 }
 0x257   :  { %v864_v34 = vadd.f32 %v863_v9, %v862_v31 }
 0x259   :  { %v844_v27 = vld [vmem:[#allocation2 + $0x50] sm:$0xff]  ;;  %v845_v32 = vld [vmem:[#allocation2 + $0x58] sm:$0xff]  ;;  %v866_v45 = vadd.f32 %v865_v35, %v864_v34 }
 0x25a   :  { %v867_v40 = vsel %vm80_vm1, %v844_v27, 0.0  ;;  %v869_v1 = vsel %vm80_vm1, %v845_v32, 0.0 }
 0x25b   :  { %v868_v42 = vadd.f32 %v867_v40, %v866_v45 }
 0x25d   :  { %v846_v43 = vld [vmem:[#allocation2 + $0x60] sm:$0xff]  ;;  %v870_v46 = vadd.f32 %v869_v1, %v868_v42 }
 0x25e   :  { %v871_v2 = vsel %vm80_vm1, %v846_v43, 0.0 }
 0x25f   :  { %v872_v38 = vadd.f32 %v871_v2, %v870_v46 }
 0x261   :  { %v873_v16 = vrot.slane %v872_v38, 4 }
 0x263   :  { %v874_v44 = vadd.f32 %v873_v16, %v872_v38 }
 0x265   :  { %v875_v36 = vrot.slane %v874_v44, 2 }
 0x267   :  { %v876_v13 = vadd.f32 %v875_v36, %v874_v44 }
 0x269   :  { %v877_v50 = vrot.slane %v876_v13, 1 }
 0x26b   :  { %v878_v51 = vadd.f32 %v877_v50, %v876_v13 }
 0x26d   :  { %880 = vst.msk [vmem:[#allocation3] sm:$0x1] %vm879_vm5, %v878_v51 }
 0x26e   :  { %1065 = shalt.err (!%p1062_p4)
}
 0x26f   :  { %s1066_s12 = scalar_lea.hbm %s1667_s2, 16 }
 0x270   :  { %p1067_p5 = scmp.ne.s32.totalorder %s1667_s2, %s1066_s12  ;;  %p1070_p6 = scmp.lt.u32.totalorder %s1066_s12, %s1667_s2 }
 0x272   :  { %p1072_p7 = pnand %p1070_p6, %p1067_p5 }
 0x274   :  { %1075 = shalt.err (!%p1072_p7)
}
 0x275   :  { %890 = dma.vmem_to_hbm [thread:$0]  %s888_s7, 16, %s1667_s2, [#allocation4]  }
 0x276   :  { %1076 = dma.done.wait [#allocation4], 16  }
 0x277   :  { %1077 = vsyncadd [#allocation4], 4294967280 }
 0x278   :  { %894 = vsyncpa [#allocation4], 1 }

</bundles_post_ra>
